<compile_context>
chip_gen: v7x
topology: tpu7x:2x2x1
jax: 0.10.0
libtpu: 0.0.40
codegen_flags: <defaults>
</compile_context>

<pallas_src>
import functools

import jax
import jax.numpy as jnp
from jax.experimental import pallas as pl
from jax.experimental.pallas import tpu as pltpu


def _coord_kernel(x_ref, w_ref, xy_ref, hm_ref, coord_ref, *, p_valid):
    # x_ref:     (bn, C, Pp)  f32   batch block, channels x flattened spatial (lanes)
    # w_ref:     (L, C)       bf16  1x1 conv weight (no bias), grid-invariant
    # xy_ref:    (Pp, 2)      f32   normalized (x, y) coordinate of every pixel
    # hm_ref:    (bn, L, Pp)        softmax heatmaps (output)
    # coord_ref: (bn, L, 2)   f32   dsnt coords, last dim = (x, y) (output)
    bn, _, pp = x_ref.shape
    l, c = w_ref.shape

    # Per-tile bf16 cast of the f32 activations (keeps the HBM stream f32 /
    # 4 B/elem -- no separate convert HLO -- while feeding the MXU bf16).
    x = x_ref[...].astype(jnp.bfloat16)                       # (bn, C, Pp)
    w = jnp.broadcast_to(w_ref[...], (bn, l, c))              # (bn, L, C) bf16

    # 1x1 conv == batched contraction over channels; f32 MXU accumulation.
    logits = jnp.einsum("blc,bcp->blp", w, x,
                        preferred_element_type=jnp.float32)   # (bn, L, Pp) f32

    if p_valid != pp:  # mask padded spatial columns so the softmax ignores them
        col = jax.lax.broadcasted_iota(jnp.int32, logits.shape, 2)
        logits = jnp.where(col < p_valid, logits, -1e30)

    # Flat softmax over the spatial (lane) axis, all in f32.
    m = jnp.max(logits, axis=-1, keepdims=True)               # (bn, L, 1)
    e = jnp.exp(logits - m)                                    # (bn, L, Pp)
    denom = jnp.sum(e, axis=-1, keepdims=True)                 # (bn, L, 1)
    inv = 1.0 / denom                                          # exact; tiny tile

    # dsnt: one fused MXU pass over all bn*L rows against the (Pp, 2) coordinate
    # table, using the unnormalized e and an exact per-row rescale so the coord
    # matmul does not serialize behind the full-tile e * inv multiply.
    e2 = e.reshape(bn * l, pp)
    raw = jnp.dot(e2, xy_ref[...],
                  preferred_element_type=jnp.float32)          # (bn*L, 2)
    coord_ref[...] = (raw.reshape(bn, l, 2) * inv).astype(coord_ref.dtype)

    # Heatmaps (optionally down-cast, e.g. bf16, to halve the write stream).
    hm_ref[...] = (e * inv).astype(hm_ref.dtype)


def _normalized_linspace(length):
    # dsntnn.normalized_linspace: linspace(-(L-1)/L, (L-1)/L, L)
    i = jnp.arange(length, dtype=jnp.float32)
    return (2.0 * i + 1.0 - length) / length


def _vmem_capacity_bytes():
    # Generation-aware VMEM size; fall back to the smallest current part (v7x:
    # 64 MiB per TensorCore) so derived limits are always legal.
    try:
        return int(pltpu.get_tpu_info().vmem_capacity_bytes)
    except Exception:
        return 64 * 1024 * 1024


def _pick_block_n(N, C, Pp, L, hm_bytes, vmem_cap):
    # Per-batch-element VMEM: double-buffered f32 x block and heatmap output
    # block, plus the in-kernel bf16 copy of x and logits / e / hm intermediates.
    bytes_per_n = (2 * C * Pp * 4 + 2 * L * Pp * hm_bytes
                   + C * Pp * 2 + 3 * L * Pp * 4)
    budget = max(vmem_cap // 4, 8 * 1024 * 1024)   # ~16 MiB on v7x, ~32 MiB on v5e/v6e
    bn = max(1, min(N, budget // max(1, bytes_per_n)))
    if N >= 2:
        bn = min(bn, max(1, N // 2))   # keep >= 2 grid steps (v7x has 2 TCs)
    while N % bn:                      # exact tiling, no partial blocks
        bn -= 1
    return bn


@functools.partial(jax.jit,
                   static_argnames=("n_locations", "block_n", "heatmap_dtype"))
def coord_regression_forward(fcn_out, weight, *, n_locations, block_n=None,
                             heatmap_dtype=jnp.bfloat16):
    """fcn_out: (N, 512, H, W) NCHW f32. weight: (L, 512) or (L, 512, 1, 1).

    Returns (coords (N, L, 2) f32, heatmaps (N, L, H, W) heatmap_dtype), matching
    the PyTorch module's forward (pass heatmap_dtype=jnp.float32 for exact dtype
    parity). Accuracy vs the pure-f32 module is bounded by bf16 rounding of x, w.
    """
    N, C, H, W = fcn_out.shape
    L = n_locations
    P = H * W
    Pp = ((P + 127) // 128) * 128      # keep the spatial (lane) axis lane-dense

    if weight.ndim == 4:               # accept the PyTorch (L, C, 1, 1) layout
        weight = weight.reshape(weight.shape[0], weight.shape[1])

    # x stays f32 in HBM; the metadata-only reshape flattens H*W onto the lanes.
    x = fcn_out.reshape(N, C, P)
    if Pp != P:
        x = jnp.pad(x, ((0, 0), (0, 0), (0, Pp - P)))
    w = weight.astype(jnp.bfloat16)    # tiny (L, C) tensor; cast is negligible

    xs = _normalized_linspace(W)                       # x coord per column
    ys = _normalized_linspace(H)                       # y coord per row
    xy = jnp.stack([jnp.tile(xs, H), jnp.repeat(ys, W)], axis=-1)   # (P, 2) f32
    if Pp != P:
        xy = jnp.pad(xy, ((0, Pp - P), (0, 0)))

    hm_bytes = jnp.dtype(heatmap_dtype).itemsize
    vmem_cap = _vmem_capacity_bytes()
    bn = block_n if block_n is not None else _pick_block_n(
        N, C, Pp, L, hm_bytes, vmem_cap)
    if N % bn:
        raise ValueError(f"block_n={bn} must divide batch size N={N}")
    grid = (N // bn,)

    # Explicit scoped-VMEM limit with headroom, never above 75% of physical VMEM
    # (legal on v7x's 64 MiB/TC, generous on v5e/v6e's 128 MiB).
    est = (2 * bn * C * Pp * 4                 # x blocks (double-buffered, f32)
           + 2 * bn * L * Pp * hm_bytes        # heatmap output blocks
           + 2 * bn * L * 2 * 4                # coord output blocks
           + 2 * (L * C * 2 + Pp * 2 * 4)      # invariant weight + xy table
           + bn * C * Pp * 2                   # in-kernel bf16 copy of x
           + 3 * bn * L * Pp * 4)              # logits / e / hm intermediates
    vmem_limit = int(min(max(int(est * 1.5), 32 * 2**20), int(0.75 * vmem_cap)))

    hm_flat, coords = pl.pallas_call(
        functools.partial(_coord_kernel, p_valid=P),
        grid=grid,
        in_specs=[
            pl.BlockSpec((bn, C, Pp), lambda n: (n, 0, 0)),
            pl.BlockSpec((L, C), lambda n: (0, 0)),
            pl.BlockSpec((Pp, 2), lambda n: (0, 0)),
        ],
        out_specs=[
            pl.BlockSpec((bn, L, Pp), lambda n: (n, 0, 0)),
            pl.BlockSpec((bn, L, 2), lambda n: (n, 0, 0)),
        ],
        out_shape=[
            jax.ShapeDtypeStruct((N, L, Pp), heatmap_dtype),
            jax.ShapeDtypeStruct((N, L, 2), jnp.float32),
        ],
        compiler_params=pltpu.CompilerParams(
            dimension_semantics=("parallel",),
            vmem_limit_bytes=vmem_limit),
    )(x, w, xy)

    if Pp != P:
        hm_flat = hm_flat[:, :, :P]
    heatmaps = hm_flat.reshape(N, L, H, W)
    return coords, heatmaps


def _reference_forward(fcn_out, weight):
    # Pure-JAX reference of the PyTorch forward (f32 math).
    N, C, H, W = fcn_out.shape
    L = weight.shape[0]
    logits = jnp.einsum("nchw,lc->nlhw", fcn_out, weight)
    flat = logits.reshape(N, L, H * W)
    hm = jax.nn.softmax(flat, axis=-1).reshape(N, L, H, W)
    xs = _normalized_linspace(W)
    ys = _normalized_linspace(H)
    cx = jnp.einsum("nlhw,w->nl", hm, xs)
    cy = jnp.einsum("nlhw,h->nl", hm, ys)
    coords = jnp.stack([cx, cy], axis=-1)
    return coords, hm


if __name__ == "__main__":
    key = jax.random.PRNGKey(0)
    k_x, k_w = jax.random.split(key)

    N, C, H, W = 2, 512, 16, 16        # in_channels must be 512 per the module
    n_locations = 16

    fcn_out = jax.random.normal(k_x, (N, C, H, W), dtype=jnp.float32)
    # Deterministic init of the 1x1 conv weight (n_locations, 512, 1, 1) -> (L, C)
    weight = (jax.random.normal(k_w, (n_locations, C), dtype=jnp.float32)
              * (1.0 / jnp.sqrt(C)))

    coords, heatmaps = coord_regression_forward(
        fcn_out, weight, n_locations=n_locations)
    jax.block_until_ready((coords, heatmaps))

    # Reference with the same bf16 rounding of x/w that the kernel applies
    # internally, so tolerances stay tight (documented accuracy bound).
    ref_coords, ref_hm = _reference_forward(
        fcn_out.astype(jnp.bfloat16).astype(jnp.float32),
        weight.astype(jnp.bfloat16).astype(jnp.float32))

    assert coords.shape == (N, n_locations, 2)
    assert heatmaps.shape == (N, n_locations, H, W)
    assert jnp.allclose(coords, ref_coords, atol=1e-3, rtol=1e-3)
    assert jnp.allclose(heatmaps.astype(jnp.float32), ref_hm,
                        atol=1e-3, rtol=1e-2)

    print("KERNEL_OK")
</pallas_src>

<mosaic_0001>
module attributes {stable_mosaic.version = 11 : i64} {
  func.func @_coord_kernel(%arg0: i32, %arg1: memref<1x512x256xf32, #tpu.memory_space<vmem>>, %arg2: memref<16x512xbf16, #tpu.memory_space<vmem>>, %arg3: memref<256x2xf32, #tpu.memory_space<vmem>>, %arg4: memref<1x16x256xbf16, #tpu.memory_space<vmem>>, %arg5: memref<1x16x2xf32, #tpu.memory_space<vmem>>) attributes {dimension_semantics = [#tpu.dimension_semantics<parallel>], iteration_bounds = array<i64: 2>, scalar_prefetch = 0 : i64, scratch_operands = 0 : i64, tpu.core_type = #tpu.core_type<tc>, window_params = [{transform_indices = @transform_0, window_bounds = array<i64: 1, 512, 256>}, {pipeline_mode = #tpu.pipeline_mode<synchronous>, transform_indices = @transform_1, window_bounds = array<i64: 16, 512>}, {pipeline_mode = #tpu.pipeline_mode<synchronous>, transform_indices = @transform_2, window_bounds = array<i64: 256, 2>}, {transform_indices = @transform_3, window_bounds = array<i64: 1, 16, 256>}, {transform_indices = @transform_4, window_bounds = array<i64: 1, 16, 2>}]} {
    %c0 = arith.constant 0 : index
    %c0_0 = arith.constant 0 : index
    %c0_1 = arith.constant 0 : index
    %0 = vector.load %arg1[%c0, %c0_0, %c0_1] : memref<1x512x256xf32, #tpu.memory_space<vmem>>, vector<1x512x256xf32>
    %1 = arith.truncf %0 : vector<1x512x256xf32> to vector<1x512x256xbf16>
    %c0_2 = arith.constant 0 : index
    %c0_3 = arith.constant 0 : index
    %2 = vector.load %arg2[%c0_2, %c0_3] : memref<16x512xbf16, #tpu.memory_space<vmem>>, vector<16x512xbf16>
    %3 = vector.shape_cast %2 : vector<16x512xbf16> to vector<1x16x512xbf16>
    "tpu.trace_start"() <{level = 10 : i32, message = "blc,bcp->blp"}> : () -> ()
    %cst = arith.constant dense<0.000000e+00> : vector<1x16x256xf32>
    %4 = tpu.matmul %3, %1, %cst {dimension_numbers = #tpu.dot_dimension_numbers<[2], [1], [1], [2], [0, 0, 0, 1, 1, 2], [0], [0]>} : vector<1x16x512xbf16>, vector<1x512x256xbf16>, vector<1x16x256xf32> -> vector<1x16x256xf32>
    "tpu.trace_stop"() : () -> ()
    %cst_4 = arith.constant dense<0xFF800000> : vector<1x16xf32>
    %5 = vector.multi_reduction <maximumf>, %4, %cst_4 [2] : vector<1x16x256xf32> to vector<1x16xf32>
    %6 = vector.shape_cast %5 : vector<1x16xf32> to vector<1x16x1xf32>
    %7 = vector.broadcast %6 : vector<1x16x1xf32> to vector<1x16x256xf32>
    %8 = arith.subf %4, %7 : vector<1x16x256xf32>
    %9 = math.exp %8 : vector<1x16x256xf32>
    %cst_5 = arith.constant dense<0.000000e+00> : vector<1x16xf32>
    %10 = vector.multi_reduction <add>, %9, %cst_5 [2] : vector<1x16x256xf32> to vector<1x16xf32>
    %11 = vector.shape_cast %10 : vector<1x16xf32> to vector<1x16x1xf32>
    %cst_6 = arith.constant 1.000000e+00 : f32
    %12 = vector.broadcast %cst_6 : f32 to vector<1x16x1xf32>
    %13 = arith.divf %12, %11 : vector<1x16x1xf32>
    %14 = vector.shape_cast %9 : vector<1x16x256xf32> to vector<16x256xf32>
    %c0_7 = arith.constant 0 : index
    %c0_8 = arith.constant 0 : index
    %15 = vector.load %arg3[%c0_7, %c0_8] : memref<256x2xf32, #tpu.memory_space<vmem>>, vector<256x2xf32>
    %cst_9 = arith.constant dense<0.000000e+00> : vector<16x2xf32>
    %16 = tpu.matmul %14, %15, %cst_9 {dimension_numbers = #tpu.dot_dimension_numbers<[1], [0], [0], [1], [0, 0, 1, 1], [], []>} : vector<16x256xf32>, vector<256x2xf32>, vector<16x2xf32> -> vector<16x2xf32>
    %17 = vector.shape_cast %16 : vector<16x2xf32> to vector<1x16x2xf32>
    %18 = vector.broadcast %13 : vector<1x16x1xf32> to vector<1x16x2xf32>
    %19 = arith.mulf %17, %18 : vector<1x16x2xf32>
    %c0_10 = arith.constant 0 : index
    %c0_11 = arith.constant 0 : index
    %c0_12 = arith.constant 0 : index
    %20 = vector.load %arg5[%c0_10, %c0_11, %c0_12] : memref<1x16x2xf32, #tpu.memory_space<vmem>>, vector<1x16x2xf32>
    tpu.vector_store %arg5[%c0_10, %c0_11, %c0_12], %19 {strides = array<i32>} : memref<1x16x2xf32, #tpu.memory_space<vmem>>, vector<1x16x2xf32>,
    %21 = vector.broadcast %13 : vector<1x16x1xf32> to vector<1x16x256xf32>
    %22 = arith.mulf %9, %21 : vector<1x16x256xf32>
    %23 = arith.truncf %22 : vector<1x16x256xf32> to vector<1x16x256xbf16>
    %c0_13 = arith.constant 0 : index
    %c0_14 = arith.constant 0 : index
    %c0_15 = arith.constant 0 : index
    %24 = vector.load %arg4[%c0_13, %c0_14, %c0_15] : memref<1x16x256xbf16, #tpu.memory_space<vmem>>, vector<1x16x256xbf16>
    tpu.vector_store %arg4[%c0_13, %c0_14, %c0_15], %23 {strides = array<i32>} : memref<1x16x256xbf16, #tpu.memory_space<vmem>>, vector<1x16x256xbf16>,
    return
  }
  func.func @transform_0(%arg0: i32) -> (i32, i32, i32) {
    %c0_i32 = arith.constant 0 : i32
    %c0_i32_0 = arith.constant 0 : i32
    %c0_i32_1 = arith.constant 0 : i32
    return %arg0, %c0_i32, %c0_i32_0 : i32, i32, i32
  }
  func.func @transform_1(%arg0: i32) -> (i32, i32) {
    %c0_i32 = arith.constant 0 : i32
    %c0_i32_0 = arith.constant 0 : i32
    %c0_i32_1 = arith.constant 0 : i32
    return %c0_i32, %c0_i32_0 : i32, i32
  }
  func.func @transform_2(%arg0: i32) -> (i32, i32) {
    %c0_i32 = arith.constant 0 : i32
    %c0_i32_0 = arith.constant 0 : i32
    %c0_i32_1 = arith.constant 0 : i32
    return %c0_i32, %c0_i32_0 : i32, i32
  }
  func.func @transform_3(%arg0: i32) -> (i32, i32, i32) {
    %c0_i32 = arith.constant 0 : i32
    %c0_i32_0 = arith.constant 0 : i32
    %c0_i32_1 = arith.constant 0 : i32
    return %arg0, %c0_i32, %c0_i32_0 : i32, i32, i32
  }
  func.func @transform_4(%arg0: i32) -> (i32, i32, i32) {
    %c0_i32 = arith.constant 0 : i32
    %c0_i32_0 = arith.constant 0 : i32
    %c0_i32_1 = arith.constant 0 : i32
    return %arg0, %c0_i32, %c0_i32_0 : i32, i32, i32
  }
}

</mosaic_0001>

<bundles_post_ra>
// kernel: tile.8
= control target key start
LH: loop header
LB: loop body
LE: loop exit
PB: predicated region body
PF: predicated region fallthrough
CT: control target
= control target key end

     0   :  { %s28_s0 = inlined_call_operand.vmem [shape: f32[16], index: 0, kind: input, shape index: {}]   ;;  %s29_s1 = inlined_call_operand.vmem [shape: f32[16,16], index: 1, kind: output, shape index: {}]  }
   0x1   :  { %v4_v0 = vld [vmem:[%s28_s0] ss:$0 sm:$0xff] }
   0x2   :  { %5 = vst [vmem:[%s29_s1] sm:$0xff] %v4_v0  ;;  %8 = vst [vmem:[%s29_s1 + $0x8] sm:$0xff] %v4_v0 }

// kernel: coord_regression_forward.1
= control target key start
LH: loop header
LB: loop body
LE: loop exit
PB: predicated region body
PF: predicated region fallthrough
CT: control target
= control target key end

     0   :  { %s932_s15 = smov 0   ;;  %s1194_s0 = inlined_call_operand.vmem [shape: f32[2,512,256], index: 0, kind: input, shape index: {}]   ;;  %s1195_s1 = inlined_call_operand.vmem [shape: bf16[16,512], index: 1, kind: input, shape index: {}]   ;;  %s1196_s2 = inlined_call_operand.vmem [shape: f32[256,2], index: 2, kind: input, shape index: {}]   ;;  %s1197_s3 = inlined_call_operand.vmem [shape: bf16[2,16,256], index: 3, kind: output, shape index: {0}]   ;;  %s1198_s4 = inlined_call_operand.vmem [shape: f32[2,16,2], index: 4, kind: output, shape index: {1}]  }
   0x1 LB: > { %s759_s16 = sadd.s32 4294967295, %s905_s15   ;;  %p763_p0 = scmp.ge.s32.totalorder %s905_s15, 1  ;;  %s905_s15 = sphi %s932_s15, %s15_s15  }
   0x2   : > { %p165_p1 = scmp.lt.s32.totalorder %s905_s15, 3 }
   0x4   : > { %p166_p2 = pnand %p763_p0, %p165_p1 }
   0x5   : > { %p196_p3 = scmp.lt.s32.totalorder (!%p166_p2), %s759_s16, 1  ;;  %v883_v0 = vld [vmem:[%s1195_s1 + $0x4] ss:$16 sps:$4 sm:$0xff] (!%p166_p2)   ;;  %v886_v1 = vld [vmem:[%s1195_s1 + $0xc] ss:$16 sps:$4 sm:$0xff] (!%p166_p2)   ;;  %vm650_vm0 = vcmask (!%p166_p2), 15360  }
   0x6   : > { %169 = sbr.rel (%p166_p2) target bundleno = 682 (0x2aa), region = 32  ;;  %459 = vmatprep.mubr.bf16.mxu1 (!%p166_p2), %v883_v0  ;;  %502 = vmatprep.mubr.bf16.mxu0 (!%p166_p2), %v886_v1 }
   0xd   : > { %s1200_s16 = smov (!%p196_p3, %s759_s16), 1 }
   0xe   : > { %s778_s21 = sshll.u32 %s1200_s16, 10 }
   0xf   : > { %s952_s24 = scalar_lea.vmem %s1194_s0, %s778_s21  ;;  %s779_s21 = sshll.u32 %s1200_s16, 4 }
  0x10   : > { %v212_v2 = vld [vmem:[%s952_s24 + $0x8] sm:$0xff]  ;;  %v214_v3 = vld [vmem:[%s952_s24 + $0x18] sm:$0xff]  ;;  %v211_v7 = vld [vmem:[%s952_s24] sm:$0xff]  ;;  %s210_s16 = scalar_lea.vmem %s1198_s4, %s779_s21 }
  0x11   : > { %v276_v4 = vld [vmem:[%s952_s24 + $0x208] sm:$0xff]  ;;  %v340_v5 = vpack.c.bf16 %v214_v3, %v212_v2  ;;  %v278_v6 = vld [vmem:[%s952_s24 + $0x218] sm:$0xff]  ;;  %v213_v8 = vld [vmem:[%s952_s24 + $0x10] sm:$0xff] }
  0x12   : > { %v372_v9 = vpack.c.bf16 %v278_v6, %v276_v4  ;;  %v339_v10 = vpack.c.bf16 %v213_v8, %v211_v7  ;;  %v275_v11 = vld [vmem:[%s952_s24 + $0x200] sm:$0xff]  ;;  %v277_v12 = vld [vmem:[%s952_s24 + $0x210] sm:$0xff]  ;;  %v216_v13 = vld [vmem:[%s952_s24 + $0x28] sm:$0xff] }
  0x13   : > { %427 = vmatprep.subr.bf16.mxu1 %v340_v5  ;;  %v371_v14 = vpack.c.bf16 %v277_v12, %v275_v11  ;;  %v218_v15 = vld [vmem:[%s952_s24 + $0x38] sm:$0xff]  ;;  %v280_v16 = vld [vmem:[%s952_s24 + $0x228] sm:$0xff]  ;;  %v215_v20 = vld [vmem:[%s952_s24 + $0x20] sm:$0xff] }
  0x14   : > { %v282_v17 = vld [vmem:[%s952_s24 + $0x238] sm:$0xff]  ;;  %470 = vmatprep.subr.bf16.mxu0 %v372_v9  ;;  %428 = vmatpush1.bf16.msra.mxu1 %v339_v10  ;;  %v342_v18 = vpack.c.bf16 %v218_v15, %v216_v13  ;;  %v217_v21 = vld [vmem:[%s952_s24 + $0x30] sm:$0xff]  ;;  %v279_v22 = vld [vmem:[%s952_s24 + $0x220] sm:$0xff] }
  0x15   : > { %v374_v19 = vpack.c.bf16 %v282_v17, %v280_v16  ;;  %471 = vmatpush1.bf16.msra.mxu0 %v371_v14  ;;  %v341_v23 = vpack.c.bf16 %v217_v21, %v215_v20  ;;  %v281_v24 = vld [vmem:[%s952_s24 + $0x230] sm:$0xff]  ;;  %v220_v25 = vld [vmem:[%s952_s24 + $0x48] sm:$0xff]  ;;  %v222_v26 = vld [vmem:[%s952_s24 + $0x58] sm:$0xff] }
  0x16   : > { %429 = vmatprep.subr.bf16.mxu1 %v342_v18  ;;  %v373_v27 = vpack.c.bf16 %v281_v24, %v279_v22  ;;  %v344_v28 = vpack.c.bf16 %v222_v26, %v220_v25  ;;  %v284_v29 = vld [vmem:[%s952_s24 + $0x248] sm:$0xff]  ;;  %v286_v30 = vld [vmem:[%s952_s24 + $0x258] sm:$0xff]  ;;  %v219_v31 = vld [vmem:[%s952_s24 + $0x40] sm:$0xff] }
  0x17   : > { %472 = vmatprep.subr.bf16.mxu0 %v374_v19  ;;  %v376_v32 = vpack.c.bf16 %v286_v30, %v284_v29  ;;  %v221_v33 = vld [vmem:[%s952_s24 + $0x50] sm:$0xff]  ;;  %v283_v34 = vld [vmem:[%s952_s24 + $0x240] sm:$0xff]  ;;  %v224_v37 = vld [vmem:[%s952_s24 + $0x68] sm:$0xff] }
  0x18   : > { %v285_v35 = vld [vmem:[%s952_s24 + $0x250] sm:$0xff]  ;;  %430 = vmatpush1.bf16.msra.mxu1 %v341_v23  ;;  %v343_v36 = vpack.c.bf16 %v221_v33, %v219_v31  ;;  %v226_v38 = vld [vmem:[%s952_s24 + $0x78] sm:$0xff]  ;;  %v288_v39 = vld [vmem:[%s952_s24 + $0x268] sm:$0xff] }
  0x19   : > { %473 = vmatpush1.bf16.msra.mxu0 %v373_v27  ;;  %431 = vmatprep.subr.bf16.mxu1 %v344_v28  ;;  %v375_v40 = vpack.c.bf16 %v285_v35, %v283_v34  ;;  %v346_v41 = vpack.c.bf16 %v226_v38, %v224_v37  ;;  %v290_v42 = vld [vmem:[%s952_s24 + $0x278] sm:$0xff]  ;;  %v223_v43 = vld [vmem:[%s952_s24 + $0x60] sm:$0xff]  ;;  %v225_v44 = vld [vmem:[%s952_s24 + $0x70] sm:$0xff] }
  0x1a   : > { %474 = vmatprep.subr.bf16.mxu0 %v376_v32  ;;  %v378_v45 = vpack.c.bf16 %v290_v42, %v288_v39  ;;  %v287_v46 = vld [vmem:[%s952_s24 + $0x260] sm:$0xff]  ;;  %v289_v47 = vld [vmem:[%s952_s24 + $0x270] sm:$0xff]  ;;  %v228_v48 = vld [vmem:[%s952_s24 + $0x88] sm:$0xff]  ;;  %v345_v52 = vpack.c.bf16 %v225_v44, %v223_v43 }
  0x1b   : > { %v230_v49 = vld [vmem:[%s952_s24 + $0x98] sm:$0xff]  ;;  %v292_v50 = vld [vmem:[%s952_s24 + $0x288] sm:$0xff]  ;;  %v377_v53 = vpack.c.bf16 %v289_v47, %v287_v46  ;;  %v227_v55 = vld [vmem:[%s952_s24 + $0x80] sm:$0xff] }
  0x1c   : > { %v294_v51 = vld [vmem:[%s952_s24 + $0x298] sm:$0xff]  ;;  %432 = vmatpush1.bf16.msra.mxu1 %v343_v36  ;;  %v348_v54 = vpack.c.bf16 %v230_v49, %v228_v48  ;;  %v229_v56 = vld [vmem:[%s952_s24 + $0x90] sm:$0xff]  ;;  %v291_v57 = vld [vmem:[%s952_s24 + $0x280] sm:$0xff] }
  0x1d   : > { %475 = vmatpush1.bf16.msra.mxu0 %v375_v40  ;;  %433 = vmatprep.subr.bf16.mxu1 %v346_v41  ;;  %v380_v58 = vpack.c.bf16 %v294_v51, %v292_v50  ;;  %v293_v59 = vld [vmem:[%s952_s24 + $0x290] sm:$0xff]  ;;  %v232_v60 = vld [vmem:[%s952_s24 + $0xa8] sm:$0xff]  ;;  %v234_v61 = vld [vmem:[%s952_s24 + $0xb8] sm:$0xff]  ;;  %v347_v0 = vpack.c.bf16 %v229_v56, %v227_v55 }
  0x1e   : > { %476 = vmatprep.subr.bf16.mxu0 %v378_v45  ;;  %v296_v62 = vld [vmem:[%s952_s24 + $0x2a8] sm:$0xff]  ;;  %v298_v63 = vld [vmem:[%s952_s24 + $0x2b8] sm:$0xff]  ;;  %v379_v1 = vpack.c.bf16 %v293_v59, %v291_v57  ;;  %v350_v2 = vpack.c.bf16 %v234_v61, %v232_v60  ;;  %v231_v3 = vld [vmem:[%s952_s24 + $0xa0] sm:$0xff] }
  0x1f   : > { %v233_v4 = vld [vmem:[%s952_s24 + $0xb0] sm:$0xff]  ;;  %v295_v5 = vld [vmem:[%s952_s24 + $0x2a0] sm:$0xff]  ;;  %v382_v6 = vpack.c.bf16 %v298_v63, %v296_v62  ;;  %v236_v8 = vld [vmem:[%s952_s24 + $0xc8] sm:$0xff] }
  0x20   : > { %434 = vmatpush1.bf16.msra.mxu1 %v345_v52  ;;  %v297_v7 = vld [vmem:[%s952_s24 + $0x2b0] sm:$0xff]  ;;  %v238_v9 = vld [vmem:[%s952_s24 + $0xd8] sm:$0xff]  ;;  %v300_v10 = vld [vmem:[%s952_s24 + $0x2c8] sm:$0xff]  ;;  %v349_v12 = vpack.c.bf16 %v233_v4, %v231_v3 }
  0x21   : > { %477 = vmatpush1.bf16.msra.mxu0 %v377_v53  ;;  %435 = vmatprep.subr.bf16.mxu1 %v348_v54  ;;  %v302_v11 = vld [vmem:[%s952_s24 + $0x2d8] sm:$0xff]  ;;  %v381_v13 = vpack.c.bf16 %v297_v7, %v295_v5  ;;  %v352_v14 = vpack.c.bf16 %v238_v9, %v236_v8  ;;  %v235_v15 = vld [vmem:[%s952_s24 + $0xc0] sm:$0xff]  ;;  %v237_v16 = vld [vmem:[%s952_s24 + $0xd0] sm:$0xff] }
  0x22   : > { %478 = vmatprep.subr.bf16.mxu0 %v380_v58  ;;  %v299_v17 = vld [vmem:[%s952_s24 + $0x2c0] sm:$0xff]  ;;  %v384_v18 = vpack.c.bf16 %v302_v11, %v300_v10  ;;  %v301_v19 = vld [vmem:[%s952_s24 + $0x2d0] sm:$0xff]  ;;  %v240_v20 = vld [vmem:[%s952_s24 + $0xe8] sm:$0xff]  ;;  %v351_v24 = vpack.c.bf16 %v237_v16, %v235_v15 }
  0x23   : > { %v242_v21 = vld [vmem:[%s952_s24 + $0xf8] sm:$0xff]  ;;  %v304_v22 = vld [vmem:[%s952_s24 + $0x2e8] sm:$0xff]  ;;  %v383_v25 = vpack.c.bf16 %v301_v19, %v299_v17  ;;  %v239_v27 = vld [vmem:[%s952_s24 + $0xe0] sm:$0xff] }
  0x24   : > { %436 = vmatpush1.bf16.msra.mxu1 %v347_v0  ;;  %v306_v23 = vld [vmem:[%s952_s24 + $0x2f8] sm:$0xff]  ;;  %v354_v26 = vpack.c.bf16 %v242_v21, %v240_v20  ;;  %v241_v28 = vld [vmem:[%s952_s24 + $0xf0] sm:$0xff]  ;;  %v303_v29 = vld [vmem:[%s952_s24 + $0x2e0] sm:$0xff] }
  0x25   : > { %479 = vmatpush1.bf16.msra.mxu0 %v379_v1  ;;  %437 = vmatprep.subr.bf16.mxu1 %v350_v2  ;;  %v386_v30 = vpack.c.bf16 %v306_v23, %v304_v22  ;;  %v305_v31 = vld [vmem:[%s952_s24 + $0x2f0] sm:$0xff]  ;;  %v244_v32 = vld [vmem:[%s952_s24 + $0x108] sm:$0xff]  ;;  %v246_v33 = vld [vmem:[%s952_s24 + $0x118] sm:$0xff]  ;;  %v353_v36 = vpack.c.bf16 %v241_v28, %v239_v27 }
  0x26   : > { %480 = vmatprep.subr.bf16.mxu0 %v382_v6  ;;  %v308_v34 = vld [vmem:[%s952_s24 + $0x308] sm:$0xff]  ;;  %v310_v35 = vld [vmem:[%s952_s24 + $0x318] sm:$0xff]  ;;  %v385_v37 = vpack.c.bf16 %v305_v31, %v303_v29  ;;  %v356_v38 = vpack.c.bf16 %v246_v33, %v244_v32  ;;  %v243_v39 = vld [vmem:[%s952_s24 + $0x100] sm:$0xff] }
  0x27   : > { %v245_v40 = vld [vmem:[%s952_s24 + $0x110] sm:$0xff]  ;;  %v307_v41 = vld [vmem:[%s952_s24 + $0x300] sm:$0xff]  ;;  %v388_v42 = vpack.c.bf16 %v310_v35, %v308_v34  ;;  %v248_v44 = vld [vmem:[%s952_s24 + $0x128] sm:$0xff] }
  0x28   : > { %438 = vmatpush1.bf16.msra.mxu1 %v349_v12  ;;  %v309_v43 = vld [vmem:[%s952_s24 + $0x310] sm:$0xff]  ;;  %v250_v45 = vld [vmem:[%s952_s24 + $0x138] sm:$0xff]  ;;  %v312_v46 = vld [vmem:[%s952_s24 + $0x328] sm:$0xff]  ;;  %v355_v48 = vpack.c.bf16 %v245_v40, %v243_v39 }
  0x29   : > { %481 = vmatpush1.bf16.msra.mxu0 %v381_v13  ;;  %439 = vmatprep.subr.bf16.mxu1 %v352_v14  ;;  %v314_v47 = vld [vmem:[%s952_s24 + $0x338] sm:$0xff]  ;;  %v387_v49 = vpack.c.bf16 %v309_v43, %v307_v41  ;;  %v358_v50 = vpack.c.bf16 %v250_v45, %v248_v44  ;;  %v247_v51 = vld [vmem:[%s952_s24 + $0x120] sm:$0xff]  ;;  %v249_v52 = vld [vmem:[%s952_s24 + $0x130] sm:$0xff] }
  0x2a   : > { %482 = vmatprep.subr.bf16.mxu0 %v384_v18  ;;  %v311_v53 = vld [vmem:[%s952_s24 + $0x320] sm:$0xff]  ;;  %v390_v54 = vpack.c.bf16 %v314_v47, %v312_v46  ;;  %v313_v55 = vld [vmem:[%s952_s24 + $0x330] sm:$0xff]  ;;  %v252_v56 = vld [vmem:[%s952_s24 + $0x148] sm:$0xff]  ;;  %v357_v60 = vpack.c.bf16 %v249_v52, %v247_v51 }
  0x2b   : > { %v254_v57 = vld [vmem:[%s952_s24 + $0x158] sm:$0xff]  ;;  %v316_v58 = vld [vmem:[%s952_s24 + $0x348] sm:$0xff]  ;;  %v389_v61 = vpack.c.bf16 %v313_v55, %v311_v53  ;;  %v251_v63 = vld [vmem:[%s952_s24 + $0x140] sm:$0xff] }
  0x2c   : > { %440 = vmatpush1.bf16.msra.mxu1 %v351_v24  ;;  %v318_v59 = vld [vmem:[%s952_s24 + $0x358] sm:$0xff]  ;;  %v360_v62 = vpack.c.bf16 %v254_v57, %v252_v56  ;;  %v253_v0 = vld [vmem:[%s952_s24 + $0x150] sm:$0xff]  ;;  %v315_v1 = vld [vmem:[%s952_s24 + $0x340] sm:$0xff] }
  0x2d   : > { %483 = vmatpush1.bf16.msra.mxu0 %v383_v25  ;;  %441 = vmatprep.subr.bf16.mxu1 %v354_v26  ;;  %v392_v2 = vpack.c.bf16 %v318_v59, %v316_v58  ;;  %v317_v3 = vld [vmem:[%s952_s24 + $0x350] sm:$0xff]  ;;  %v256_v4 = vld [vmem:[%s952_s24 + $0x168] sm:$0xff]  ;;  %v258_v5 = vld [vmem:[%s952_s24 + $0x178] sm:$0xff]  ;;  %v359_v8 = vpack.c.bf16 %v253_v0, %v251_v63 }
  0x2e   : > { %484 = vmatprep.subr.bf16.mxu0 %v386_v30  ;;  %v320_v6 = vld [vmem:[%s952_s24 + $0x368] sm:$0xff]  ;;  %v322_v7 = vld [vmem:[%s952_s24 + $0x378] sm:$0xff]  ;;  %v391_v9 = vpack.c.bf16 %v317_v3, %v315_v1  ;;  %v362_v10 = vpack.c.bf16 %v258_v5, %v256_v4  ;;  %v255_v11 = vld [vmem:[%s952_s24 + $0x160] sm:$0xff] }
  0x2f   : > { %v257_v12 = vld [vmem:[%s952_s24 + $0x170] sm:$0xff]  ;;  %v319_v13 = vld [vmem:[%s952_s24 + $0x360] sm:$0xff]  ;;  %v394_v14 = vpack.c.bf16 %v322_v7, %v320_v6  ;;  %v260_v16 = vld [vmem:[%s952_s24 + $0x188] sm:$0xff] }
  0x30   : > { %442 = vmatpush1.bf16.msra.mxu1 %v353_v36  ;;  %v321_v15 = vld [vmem:[%s952_s24 + $0x370] sm:$0xff]  ;;  %v262_v17 = vld [vmem:[%s952_s24 + $0x198] sm:$0xff]  ;;  %v324_v18 = vld [vmem:[%s952_s24 + $0x388] sm:$0xff]  ;;  %v361_v20 = vpack.c.bf16 %v257_v12, %v255_v11 }
  0x31   : > { %485 = vmatpush1.bf16.msra.mxu0 %v385_v37  ;;  %443 = vmatprep.subr.bf16.mxu1 %v356_v38  ;;  %v326_v19 = vld [vmem:[%s952_s24 + $0x398] sm:$0xff]  ;;  %v393_v21 = vpack.c.bf16 %v321_v15, %v319_v13  ;;  %v364_v22 = vpack.c.bf16 %v262_v17, %v260_v16  ;;  %v259_v23 = vld [vmem:[%s952_s24 + $0x180] sm:$0xff]  ;;  %v261_v24 = vld [vmem:[%s952_s24 + $0x190] sm:$0xff] }
  0x32   : > { %486 = vmatprep.subr.bf16.mxu0 %v388_v42  ;;  %v323_v25 = vld [vmem:[%s952_s24 + $0x380] sm:$0xff]  ;;  %v396_v26 = vpack.c.bf16 %v326_v19, %v324_v18  ;;  %v325_v27 = vld [vmem:[%s952_s24 + $0x390] sm:$0xff]  ;;  %v264_v28 = vld [vmem:[%s952_s24 + $0x1a8] sm:$0xff]  ;;  %v363_v32 = vpack.c.bf16 %v261_v24, %v259_v23 }
  0x33   : > { %v266_v29 = vld [vmem:[%s952_s24 + $0x1b8] sm:$0xff]  ;;  %v328_v30 = vld [vmem:[%s952_s24 + $0x3a8] sm:$0xff]  ;;  %v395_v33 = vpack.c.bf16 %v325_v27, %v323_v25  ;;  %v263_v35 = vld [vmem:[%s952_s24 + $0x1a0] sm:$0xff] }
  0x34   : > { %444 = vmatpush1.bf16.msra.mxu1 %v355_v48  ;;  %v330_v31 = vld [vmem:[%s952_s24 + $0x3b8] sm:$0xff]  ;;  %v366_v34 = vpack.c.bf16 %v266_v29, %v264_v28  ;;  %v265_v36 = vld [vmem:[%s952_s24 + $0x1b0] sm:$0xff]  ;;  %v327_v37 = vld [vmem:[%s952_s24 + $0x3a0] sm:$0xff] }
  0x35   : > { %487 = vmatpush1.bf16.msra.mxu0 %v387_v49  ;;  %445 = vmatprep.subr.bf16.mxu1 %v358_v50  ;;  %v398_v38 = vpack.c.bf16 %v330_v31, %v328_v30  ;;  %v329_v39 = vld [vmem:[%s952_s24 + $0x3b0] sm:$0xff]  ;;  %v268_v40 = vld [vmem:[%s952_s24 + $0x1c8] sm:$0xff]  ;;  %v270_v41 = vld [vmem:[%s952_s24 + $0x1d8] sm:$0xff]  ;;  %v365_v44 = vpack.c.bf16 %v265_v36, %v263_v35 }
  0x36   : > { %488 = vmatprep.subr.bf16.mxu0 %v390_v54  ;;  %v332_v42 = vld [vmem:[%s952_s24 + $0x3c8] sm:$0xff]  ;;  %v334_v43 = vld [vmem:[%s952_s24 + $0x3d8] sm:$0xff]  ;;  %v397_v45 = vpack.c.bf16 %v329_v39, %v327_v37  ;;  %v368_v46 = vpack.c.bf16 %v270_v41, %v268_v40  ;;  %v267_v47 = vld [vmem:[%s952_s24 + $0x1c0] sm:$0xff] }
  0x37   : > { %v269_v48 = vld [vmem:[%s952_s24 + $0x1d0] sm:$0xff]  ;;  %v331_v49 = vld [vmem:[%s952_s24 + $0x3c0] sm:$0xff]  ;;  %v400_v50 = vpack.c.bf16 %v334_v43, %v332_v42  ;;  %v272_v52 = vld [vmem:[%s952_s24 + $0x1e8] sm:$0xff] }
  0x38   : > { %446 = vmatpush1.bf16.msra.mxu1 %v357_v60  ;;  %v333_v51 = vld [vmem:[%s952_s24 + $0x3d0] sm:$0xff]  ;;  %v274_v53 = vld [vmem:[%s952_s24 + $0x1f8] sm:$0xff]  ;;  %v336_v54 = vld [vmem:[%s952_s24 + $0x3e8] sm:$0xff]  ;;  %v367_v56 = vpack.c.bf16 %v269_v48, %v267_v47 }
  0x39   : > { %489 = vmatpush1.bf16.msra.mxu0 %v389_v61  ;;  %447 = vmatprep.subr.bf16.mxu1 %v360_v62  ;;  %v338_v55 = vld [vmem:[%s952_s24 + $0x3f8] sm:$0xff]  ;;  %v399_v57 = vpack.c.bf16 %v333_v51, %v331_v49  ;;  %v370_v58 = vpack.c.bf16 %v274_v53, %v272_v52  ;;  %v271_v59 = vld [vmem:[%s952_s24 + $0x1e0] sm:$0xff]  ;;  %v273_v60 = vld [vmem:[%s952_s24 + $0x1f0] sm:$0xff] }
  0x3a   : > { %490 = vmatprep.subr.bf16.mxu0 %v392_v2  ;;  %v402_v61 = vpack.c.bf16 %v338_v55, %v336_v54  ;;  %v335_v62 = vld [vmem:[%s952_s24 + $0x3e0] sm:$0xff]  ;;  %v337_v63 = vld [vmem:[%s952_s24 + $0x3f0] sm:$0xff]  ;;  %v369_v0 = vpack.c.bf16 %v273_v60, %v271_v59  ;;  %v884_v3 = vld [vmem:[%s1195_s1 + $0x8] ss:$16 sps:$4 sm:$0xff]   ;;  %s205_s24 = scalar_lea.vmem %s1197_s3, %s779_s21 }
  0x3b   : > { %v401_v1 = vpack.c.bf16 %v337_v63, %v335_v62  ;;  %v881_v2 = vld [vmem:[%s1195_s1] ss:$16 sps:$4 sm:$0xff]   ;;  %v558_v5 = vld [vmem:[%s1196_s2 + $0x88] sm:$0xff]  ;;  %v568_v49 = vld [vmem:[%s1196_s2 + $0xd8] sm:$0xff] }
  0x3c   : > { %448 = vmatpush1.bf16.msra.mxu1 %v359_v8  ;;  %v557_v4 = vld [vmem:[%s1196_s2 + $0x80] sm:$0xff]  ;;  %v542_v8 = vld [vmem:[%s1196_s2 + $0x8] sm:$0xff]  ;;  %v543_v13 = vld [vmem:[%s1196_s2 + $0x10] sm:$0xff] }
  0x3d   : > { %491 = vmatpush1.bf16.msra.mxu0 %v391_v9  ;;  %449 = vmatprep.subr.bf16.mxu1 %v362_v10  ;;  %v541_v6 = vld [vmem:[%s1196_s2] sm:$0xff]  ;;  %v821_v7 = vpack.c.bf16 %v558_v5, %v557_v4  ;;  %v559_v9 = vld [vmem:[%s1196_s2 + $0x90] sm:$0xff]  ;;  %v560_v10 = vld [vmem:[%s1196_s2 + $0x98] sm:$0xff] }
  0x3e   : > { %492 = vmatprep.subr.bf16.mxu0 %v394_v14  ;;  %v823_v11 = vpack.c.bf16 %v542_v8, %v541_v6  ;;  %v825_v12 = vpack.c.bf16 %v560_v10, %v559_v9  ;;  %v544_v14 = vld [vmem:[%s1196_s2 + $0x18] sm:$0xff]  ;;  %v561_v15 = vld [vmem:[%s1196_s2 + $0xa0] sm:$0xff]  ;;  %v562_v16 = vld [vmem:[%s1196_s2 + $0xa8] sm:$0xff] }
  0x3f   : > { %v827_v17 = vpack.c.bf16 %v544_v14, %v543_v13  ;;  %v829_v18 = vpack.c.bf16 %v562_v16, %v561_v15  ;;  %v545_v19 = vld [vmem:[%s1196_s2 + $0x20] sm:$0xff]  ;;  %v547_v25 = vld [vmem:[%s1196_s2 + $0x30] sm:$0xff]  ;;  %v566_v43 = vld [vmem:[%s1196_s2 + $0xc8] sm:$0xff] }
  0x40   : > { %450 = vmatpush1.bf16.msra.mxu1 %v361_v20  ;;  %v546_v20 = vld [vmem:[%s1196_s2 + $0x28] sm:$0xff]  ;;  %v565_v42 = vld [vmem:[%s1196_s2 + $0xc0] sm:$0xff]  ;;  %v567_v48 = vld [vmem:[%s1196_s2 + $0xd0] sm:$0xff] }
  0x41   : > { %493 = vmatpush1.bf16.msra.mxu0 %v393_v21  ;;  %451 = vmatprep.subr.bf16.mxu1 %v364_v22  ;;  %v563_v21 = vld [vmem:[%s1196_s2 + $0xb0] sm:$0xff]  ;;  %v564_v22 = vld [vmem:[%s1196_s2 + $0xb8] sm:$0xff]  ;;  %v831_v23 = vpack.c.bf16 %v546_v20, %v545_v19  ;;  %v569_v54 = vld [vmem:[%s1196_s2 + $0xe0] sm:$0xff] }
  0x42   : > { %494 = vmatprep.subr.bf16.mxu0 %v396_v26  ;;  %v833_v24 = vpack.c.bf16 %v564_v22, %v563_v21  ;;  %v548_v26 = vld [vmem:[%s1196_s2 + $0x38] sm:$0xff]  ;;  %v551_v51 = vld [vmem:[%s1196_s2 + $0x50] sm:$0xff]  ;;  %v570_v55 = vld [vmem:[%s1196_s2 + $0xe8] sm:$0xff] }
  0x43   : > { %v835_v27 = vpack.c.bf16 %v548_v26, %v547_v25  ;;  %v552_v52 = vld [vmem:[%s1196_s2 + $0x58] sm:$0xff]  ;;  %v571_v60 = vld [vmem:[%s1196_s2 + $0xf0] sm:$0xff] }
  0x44   : > { %452 = vmatpush1.bf16.msra.mxu1 %v363_v32  ;;  %v843_v53 = vpack.c.bf16 %v552_v52, %v551_v51  ;;  %v555_v62 = vld [vmem:[%s1196_s2 + $0x70] sm:$0xff] }
  0x45   : > { %495 = vmatpush1.bf16.msra.mxu0 %v395_v33  ;;  %453 = vmatprep.subr.bf16.mxu1 %v366_v34 }
  0x46   : > { %496 = vmatprep.subr.bf16.mxu0 %v398_v38 }
  0x48   : > { %454 = vmatpush1.bf16.msra.mxu1 %v365_v44  ;;  %v837_v44 = vpack.c.bf16 %v566_v43, %v565_v42 }
  0x49   : > { %497 = vmatpush1.bf16.msra.mxu0 %v397_v45  ;;  %455 = vmatprep.subr.bf16.mxu1 %v368_v46  ;;  %v549_v45 = vld [vmem:[%s1196_s2 + $0x40] sm:$0xff]  ;;  %v550_v46 = vld [vmem:[%s1196_s2 + $0x48] sm:$0xff] }
  0x4a   : > { %498 = vmatprep.subr.bf16.mxu0 %v400_v50  ;;  %v839_v47 = vpack.c.bf16 %v550_v46, %v549_v45  ;;  %v841_v50 = vpack.c.bf16 %v568_v49, %v567_v48 }
  0x4c   : > { %456 = vmatpush1.bf16.msra.mxu1 %v367_v56  ;;  %v845_v56 = vpack.c.bf16 %v570_v55, %v569_v54 }
  0x4d   : > { %499 = vmatpush1.bf16.msra.mxu0 %v399_v57  ;;  %457 = vmatprep.subr.bf16.mxu1 %v370_v58  ;;  %v553_v57 = vld [vmem:[%s1196_s2 + $0x60] sm:$0xff]  ;;  %v554_v58 = vld [vmem:[%s1196_s2 + $0x68] sm:$0xff] }
  0x4e   : > { %500 = vmatprep.subr.bf16.mxu0 %v402_v61  ;;  %v847_v59 = vpack.c.bf16 %v554_v58, %v553_v57  ;;  %v572_v61 = vld [vmem:[%s1196_s2 + $0xf8] sm:$0xff] }
  0x4f   : > { %v849_v63 = vpack.c.bf16 %v572_v61, %v571_v60 }
  0x50   : > { %458 = vmatpush1.bf16.msra.mxu1 %v369_v0  ;;  %v556_v0 = vld [vmem:[%s1196_s2 + $0x78] sm:$0xff] }
  0x51   : > { %501 = vmatpush1.bf16.msra.mxu0 %v401_v1  ;;  %853 = vmatprep.subr.bf16.mxu1 %v821_v7  ;;  %v851_v1 = vpack.c.bf16 %v556_v0, %v555_v62 }
  0x52   : > { %822 = vmatprep.subr.bf16.mxu0 %v821_v7 }
  0x53   : > { %460 = vmatmul.mubr.bf16.vlgmr.msra.gmra.mrb[0].mxu1 %v881_v2 }
  0x54   : > { %503 = vmatmul.mubr.bf16.vlgmr.msra.gmra.mrb[0].mxu0 %v884_v3  ;;  %861 = vmatpush3.bf16.msra.mxu1 %v823_v11 }
  0x55   : > { %824 = vmatpush3.bf16.msra.mxu0 %v823_v11  ;;  %854 = vmatprep.subr.bf16.mxu1 %v825_v12 }
  0x56   : > { %826 = vmatprep.subr.bf16.mxu0 %v825_v12 }
  0x58   : > { %862 = vmatpush3.bf16.msra.mxu1 %v827_v17 }
  0x59   : > { %828 = vmatpush3.bf16.msra.mxu0 %v827_v17  ;;  %855 = vmatprep.subr.bf16.mxu1 %v829_v18 }
  0x5a   : > { %830 = vmatprep.subr.bf16.mxu0 %v829_v18 }
  0x5c   : > { %863 = vmatpush3.bf16.msra.mxu1 %v831_v23 }
  0x5d   : > { %832 = vmatpush3.bf16.msra.mxu0 %v831_v23  ;;  %856 = vmatprep.subr.bf16.mxu1 %v833_v24 }
  0x5e   : > { %834 = vmatprep.subr.bf16.mxu0 %v833_v24 }
  0x60   : > { %864 = vmatpush3.bf16.msra.mxu1 %v835_v27 }
  0x61   : > { %836 = vmatpush3.bf16.msra.mxu0 %v835_v27  ;;  %857 = vmatprep.subr.bf16.mxu1 %v837_v44 }
  0x62   : > { %838 = vmatprep.subr.bf16.mxu0 %v837_v44 }
  0x64   : > { %865 = vmatpush3.bf16.msra.mxu1 %v839_v47 }
  0x65   : > { %840 = vmatpush3.bf16.msra.mxu0 %v839_v47  ;;  %858 = vmatprep.subr.bf16.mxu1 %v841_v50 }
  0x66   : > { %842 = vmatprep.subr.bf16.mxu0 %v841_v50 }
  0x68   : > { %866 = vmatpush3.bf16.msra.mxu1 %v843_v53 }
  0x69   : > { %844 = vmatpush3.bf16.msra.mxu0 %v843_v53  ;;  %859 = vmatprep.subr.bf16.mxu1 %v845_v56 }
  0x6a   : > { %846 = vmatprep.subr.bf16.mxu0 %v845_v56 }
  0x6c   : > { %867 = vmatpush3.bf16.msra.mxu1 %v847_v59 }
  0x6d   : > { %848 = vmatpush3.bf16.msra.mxu0 %v847_v59  ;;  %860 = vmatprep.subr.bf16.mxu1 %v849_v63 }
  0x6e   : > { %850 = vmatprep.subr.bf16.mxu0 %v849_v63 }
  0x70   : > { %868 = vmatpush3.bf16.msra.mxu1 %v851_v1 }
  0x71   : > { %852 = vmatpush3.bf16.msra.mxu0 %v851_v1 }
 0x126   : > { %v461_v28 = vpop.f32.mrb[0].mxu1 }
 0x127   : > { %v504_v29 = vpop.f32.mrb[0].mxu0  ;;  %v463_v30 = vpop.f32.mrb[1].mxu1 }
 0x128   : > { %v505_v31 = vadd.f32 %v504_v29, %v461_v28  ;;  %v506_v32 = vpop.f32.mrb[1].mxu0  ;;  %v465_v33 = vpop.f32.mrb[2].mxu1 }
 0x129   : > { %v507_v34 = vadd.f32 %v506_v32, %v463_v30  ;;  %v508_v35 = vpop.f32.mrb[2].mxu0  ;;  %v467_v36 = vpop.f32.mrb[3].mxu1 }
 0x12a   : > { %v509_v37 = vadd.f32 %v508_v35, %v465_v33  ;;  %v510_v38 = vpop.f32.mrb[3].mxu0 }
 0x12b   : > { %v511_v39 = vadd.f32 %v510_v38, %v467_v36  ;;  %v513_v40 = vmax.f32 %v505_v31, %v507_v34 }
 0x12d   : > { %514 = vmax.xlane.f32.xlu0 %v513_v40  ;;  %v516_v41 = vmax.f32 %v509_v37, %v511_v39 }
 0x131   : > { %517 = vmax.xlane.f32.xlu0 %v516_v41 }
 0x1ba   : > { %v515_v2 = vpop.xlane.xlu0 %514 }
 0x1bb   : > { %v519_v3 = vsub.f32 %v505_v31, %v515_v2  ;;  %v520_v4 = vsub.f32 %v507_v34, %v515_v2 }
 0x1bd   : > { %v523_v5 = vmul.f32 1.442695, %v519_v3  ;;  %v525_v6 = vmul.f32 1.442695, %v520_v4 }
 0x1be   : > { %v518_v7 = vpop.xlane.xlu0 %517 }
 0x1bf   : > { %887 = vpow2.f32 %v523_v5  ;;  %v521_v8 = vsub.f32 %v509_v37, %v518_v7  ;;  %v522_v9 = vsub.f32 %v511_v39, %v518_v7 }
 0x1c0   : > { %889 = vpow2.f32 %v525_v6 }
 0x1c1   : > { %v527_v10 = vmul.f32 1.442695, %v521_v8  ;;  %v529_v11 = vmul.f32 1.442695, %v522_v9 }
 0x1c3   : > { %891 = vpow2.f32 %v527_v10 }
 0x1c4   : > { %893 = vpow2.f32 %v529_v11 }
 0x1c9   : > { %v888_v12 = vpop.eup %887 }
 0x1ca   : > { %v890_v13 = vpop.eup %889 }
 0x1cb   : > { %637 = vmatprep.mubr.f32.mxu0 %v890_v13  ;;  %v531_v14 = vadd.f32 %v890_v13, %v888_v12 }
 0x1cc   : > { %638 = vmatmul.mubr.f32.vlgmr.msra.gmra.mrb[4].mxu0 %v888_v12 }
 0x1cd   : > { %v892_v15 = vpop.eup %891  ;;  %532 = vadd.xlane.f32.xlu1 %v531_v14 }
 0x1ce   : > { %v894_v16 = vpop.eup %893 }
 0x1cf   : > { %642 = vmatprep.mubr.f32.mxu1 %v894_v16  ;;  %v534_v17 = vadd.f32 %v894_v16, %v892_v15 }
 0x1d0   : > { %643 = vmatmul.mubr.f32.vlgmr.msra.gmra.mrb[4].mxu1 %v892_v15 }
 0x1d1   : > { %535 = vadd.xlane.f32.xlu1 %v534_v17 }
 0x25a   : > { %v533_v18 = vpop.xlane.xlu1 %532 }
 0x25b   : > { %895 = vrcp.f32 %v533_v18 }
 0x25e   : > { %v536_v19 = vpop.xlane.xlu1 %535 }
 0x25f   : > { %897 = vrcp.f32 %v536_v19 }
 0x265   : > { %v896_v20 = vpop.eup %895 }
 0x266   : > { %v653_v21 = vmul.f32 %v896_v20, %v888_v12  ;;  %v654_v22 = vmul.f32 %v896_v20, %v890_v13 }
 0x268   : > { %v781_v23 = vpack.c.bf16 %v654_v22, %v653_v21 }
 0x269   : > { %v898_v24 = vpop.eup %897 }
 0x26a   : > { %v655_v25 = vmul.f32 %v898_v24, %v892_v15  ;;  %v656_v26 = vmul.f32 %v898_v24, %v894_v16  ;;  %669 = vst [vmem:[%s205_s24] sm:$0xff] %v781_v23 }
 0x26c   : > { %v782_v27 = vpack.c.bf16 %v656_v26, %v655_v25 }
 0x26e   : > { %670 = vst [vmem:[%s205_s24 + $0x8] sm:$0xff] %v782_v27 }
 0x29f   : > { %v815_v28 = vpop.f32.mrb[4].mxu0 }
 0x2a0   : > { %v816_v29 = vpop.f32.mrb[5].mxu0 }
 0x2a1   : > { %v817_v30 = vadd.f32 %v816_v29, %v815_v28 }
 0x2a3   : > { %v648_v31 = vmul.f32 %v896_v20, %v817_v30  ;;  %v818_v32 = vpop.f32.mrb[4].mxu1 }
 0x2a4   : > { %v819_v33 = vpop.f32.mrb[5].mxu1 }
 0x2a5   : > { %651 = vst.msk [vmem:[%s210_s16] sm:$0xff] %vm650_vm0, %v648_v31  ;;  %v820_v34 = vadd.f32 %v819_v33, %v818_v32 }
 0x2a7   : > { %v649_v35 = vmul.f32 %v898_v24, %v820_v34 }
 0x2a9   : > { %652 = vst.msk [vmem:[%s210_s16 + $0x8] sm:$0xff] %vm650_vm0, %v649_v35 }
 0x2aa PF: > { %s15_s15 = sadd.s32 1, %s905_s15  }
 0x2ab   : > { %p12_p4 = scmp.ge.s32.totalorder %s15_s15, 4  }
 0x2ad   :  { %14 = sbr.rel (!%p12_p4) target bundleno = 1 (0x1), region = 74 }

</bundles_post_ra>
